<compile_context>
chip_gen: v5e
topology: v5e:2x2
jax: 0.10.0
libtpu: 0.0.40
codegen_flags: <defaults>
</compile_context>

<pallas_src>
import functools

import jax
import jax.numpy as jnp
from jax.experimental import pallas as pl
from jax.experimental.pallas import tpu as pltpu


def _out_dim(n, k, s, p, dl):
    return (n + 2 * p - dl * (k - 1) - 1) // s + 1


def _in_extent(prev, nxt, k, s, p, dl):
    """Extent of the (-inf padded) dense input buffer for one layer.

    For s > 1 the extent is extended so the in-kernel slice + leading-dim reshape
    stride-s subsample always has room; the extra rows only ever land in dropped
    remainder slots and never win a max.
    """
    if s == 1:
        return tuple(pd + 2 * p for pd in prev)
    return tuple(max(pd + 2 * p, dl * (k - 1) + od * s) for pd, od in zip(prev, nxt))


def _pool_separable(src, out_dims, k, s, dl):
    """Separable max over the k^3 taps of one SparseMaxPool3d layer.

    src: 4-D Ref (De, He, We, C) holding the (-inf padded) layer input in VMEM.
    Reduces W (sublane axis, k strided ref loads) -> H (major) -> D (major).
    Returns (OD, OH, OW, C); still -inf where no active voxel fell in the window.
    """
    OD, OH, OW = out_dims
    C = src.shape[-1]
    DU = dl * (k - 1) + OD * s      # D rows needed by the later stages
    HU = dl * (k - 1) + OH * s      # H rows needed by the later stages

    # --- W (sublane axis): strided loads straight from the VMEM ref.
    w_red = None
    for kw in range(k):
        if s == 1:
            t = src[pl.ds(0, DU), pl.ds(0, HU), pl.ds(kw * dl, OW), :]
        else:
            t = src[pl.ds(0, DU), pl.ds(0, HU), pl.ds(kw * dl, OW, stride=s), :]
        w_red = t if w_red is None else jnp.maximum(w_red, t)

    # --- H (major axis): contiguous slice + leading-dims-only reshape subsample
    #     (pure tile-row selection; last two dims (OW, C) are untouched).
    h_red = None
    for kh in range(k):
        t = w_red[:, kh * dl:kh * dl + OH * s]
        if s > 1:
            t = t.reshape(DU, OH, s, OW, C)[:, :, 0]
        h_red = t if h_red is None else jnp.maximum(h_red, t)

    # --- D (major axis): same trick.
    d_red = None
    for kd in range(k):
        t = h_red[kd * dl:kd * dl + OD * s]
        if s > 1:
            t = t.reshape(OD, s, OH, OW, C)[:, 0]
        d_red = t if d_red is None else jnp.maximum(d_red, t)
    return d_red


def _fused_sparse_maxpool_kernel(off_ref, z_ref, y_ref, x_ref,   # SMEM (scalar prefetch)
                                 feat_ref,                        # VMEM input (N, C)
                                 o_ref,                           # VMEM output block
                                 *bufs,                           # VMEM scratch (per layer)
                                 out_dims, k, s, p, dl):
    """Sparse->dense scatter + all pooling layers + densify epilogue for one batch."""
    num_layers = len(out_dims)
    C = feat_ref.shape[-1]
    b = pl.program_id(0)

    # ---- Fused densify: -inf background + per-point scatter, entirely in VMEM.
    buf0 = bufs[0]
    buf0[...] = jnp.full(buf0.shape, -jnp.inf, buf0.dtype)
    We = buf0.shape[2]
    w_iota = jax.lax.broadcasted_iota(jnp.int32, (1, 1, We, C), 2)  # hoisted constant

    start = off_ref[b]
    stop = off_ref[b + 1]

    def scatter_body(i, carry):
        z = z_ref[i] + p
        y = y_ref[i] + p
        x = x_ref[i] + p
        row = feat_ref[pl.ds(i, 1), :].reshape(1, 1, 1, C)
        # Read-modify-write of the (z, y) W-row: dynamic addressing only on the
        # leading (untiled) dims; the W position is selected with an iota compare.
        cur = buf0[pl.ds(z, 1), pl.ds(y, 1), :, :]
        buf0[pl.ds(z, 1), pl.ds(y, 1), :, :] = jnp.where(w_iota == x, row, cur)
        return carry

    jax.lax.fori_loop(start, stop, scatter_body, 0)

    # ---- All pooling layers fused; intermediates never leave VMEM.
    src = buf0
    for li in range(num_layers):
        OD, OH, OW = out_dims[li]
        pooled = _pool_separable(src, (OD, OH, OW), k, s, dl)
        if li + 1 < num_layers:
            nxt = bufs[li + 1]
            if p > 0:
                # Border must be -inf when padding is used.
                nxt[...] = jnp.full(nxt.shape, -jnp.inf, pooled.dtype)
            # When p == 0 the scratch tail past (OD, OH, OW) is provably never read
            # into a surviving output element, so the full -inf fill pass is skipped.
            nxt[pl.ds(p, OD), pl.ds(p, OH), pl.ds(p, OW), :] = pooled
            src = nxt
        else:
            # Fused epilogue: SparseConvTensor.dense() -> inactive voxels become 0.
            o_ref[...] = jnp.where(pooled == -jnp.inf,
                                   jnp.zeros_like(pooled), pooled).astype(o_ref.dtype)


class SparseMaxPoolTestPallas:
    """JAX/Pallas equivalent of SparseMaxPoolTestTorch (no learnable params)."""

    def __init__(self, num_layers, ndim, shape, kernel_size, stride, padding, dilation):
        del ndim  # unused, as in the reference module
        self.num_layers = num_layers
        self.shape = tuple(shape) if isinstance(shape, (list, tuple)) else (shape,) * 3
        self.k, self.s, self.p, self.dl = kernel_size, stride, padding, dilation

    def __call__(self, features, coors, batch_size):
        # features: (N, C) float32 ; coors: (N, 4) int [batch, z, y, x]
        coors = coors.astype(jnp.int32)
        k, s, p, dl = self.k, self.s, self.p, self.dl
        N, C = features.shape
        dtype = features.dtype

        # Per-layer output dims and per-layer padded buffer extents.
        out_dims, exts = [], []
        cur = self.shape
        for _ in range(self.num_layers):
            nxt = tuple(_out_dim(n, k, s, p, dl) for n in cur)
            exts.append(_in_extent(cur, nxt, k, s, p, dl))
            out_dims.append(nxt)
            cur = nxt

        # Group points by batch (stable) so each grid step scans only its own slice.
        # Coordinates + offsets go to SMEM via scalar prefetch; features stay in VMEM.
        b_ids = coors[:, 0]
        order = jnp.argsort(b_ids)
        coors_s = coors[order]
        feats_s = features[order]
        counts = jnp.bincount(b_ids, length=batch_size).astype(jnp.int32)
        offsets = jnp.concatenate(
            [jnp.zeros((1,), jnp.int32), jnp.cumsum(counts).astype(jnp.int32)])
        zs, ys, xs = coors_s[:, 1], coors_s[:, 2], coors_s[:, 3]

        scratch_shapes = [pltpu.VMEM((*e, C), dtype) for e in exts]

        # --- VMEM budget (per generation: v7x has 64 MiB, v5e/v6e 128 MiB).
        itemsize = jnp.dtype(dtype).itemsize

        def padded_bytes(shape):
            d = list(shape)
            d[-1] = -(-d[-1] // 128) * 128
            d[-2] = -(-d[-2] // 8) * 8
            n = 1
            for v in d:
                n *= v
            return n * itemsize

        need = (2 * padded_bytes((N, C))                     # double-buffered features
                + 2 * padded_bytes((*out_dims[-1], C))       # double-buffered out block
                + sum(padded_bytes((*e, C)) for e in exts))  # layer scratch buffers
        try:
            phys_vmem = pltpu.get_tpu_info().vmem_capacity_bytes
        except Exception:  # conservative fallback if the query is unavailable
            phys_vmem = 128 * 1024 * 1024
        vmem_limit = int(min(phys_vmem * 3 // 4,
                             max(32 * 1024 * 1024, 2 * need + (4 << 20))))

        # Advisory cost hint: only features/coords in and the pooled output out cross
        # HBM (the dense volume lives purely in VMEM).
        flops = sum(batch_size * (k ** 3) * od[0] * od[1] * od[2] * C for od in out_dims)
        out_elems = batch_size * out_dims[-1][0] * out_dims[-1][1] * out_dims[-1][2] * C
        bytes_accessed = (N * C + out_elems) * itemsize + 4 * N * 4
        cost = pl.CostEstimate(flops=int(flops), transcendentals=0,
                               bytes_accessed=int(bytes_accessed))

        kern = functools.partial(_fused_sparse_maxpool_kernel,
                                 out_dims=tuple(out_dims), k=k, s=s, p=p, dl=dl)

        out = pl.pallas_call(
            kern,
            out_shape=jax.ShapeDtypeStruct((batch_size, *out_dims[-1], C), dtype),
            grid_spec=pltpu.PrefetchScalarGridSpec(
                num_scalar_prefetch=4,                      # offsets, z, y, x -> SMEM
                grid=(batch_size,),
                in_specs=[pl.BlockSpec((N, C), lambda b, *_: (0, 0))],
                out_specs=pl.BlockSpec((None, *out_dims[-1], C),
                                       lambda b, *_: (b, 0, 0, 0, 0)),
                scratch_shapes=scratch_shapes),
            compiler_params=pltpu.CompilerParams(
                dimension_semantics=("parallel",),
                vmem_limit_bytes=vmem_limit),
            cost_estimate=cost,
        )(offsets, zs, ys, xs, feats_s)

        # Equivalent of SparseConvTensor.dense() layout: NCDHW. The tensor here is
        # 8^num_layers x smaller than the input, so this transpose is negligible.
        return jnp.transpose(out, (0, 4, 1, 2, 3))


def _reference_forward(features, coors, batch_size, shape, num_layers, k, s, p, dl):
    """Independent pure-JAX reference (reduce_window with -inf padding)."""
    D, H, W = shape
    C = features.shape[-1]
    x = jnp.full((batch_size, D, H, W, C), -jnp.inf, features.dtype)
    x = x.at[coors[:, 0], coors[:, 1], coors[:, 2], coors[:, 3], :].set(features)
    for _ in range(num_layers):
        x = jax.lax.reduce_window(
            x, -jnp.inf, jax.lax.max,
            window_dimensions=(1, k, k, k, 1),
            window_strides=(1, s, s, s, 1),
            padding=((0, 0), (p, p), (p, p), (p, p), (0, 0)),
            window_dilation=(1, dl, dl, dl, 1))
    x = jnp.where(jnp.isneginf(x), jnp.zeros_like(x), x)
    return jnp.transpose(x, (0, 4, 1, 2, 3))


if __name__ == "__main__":
    # Small deterministic config consistent with the module's forward.
    num_layers = 2
    ndim = 3
    shape = 8              # spatial shape D = H = W = 8
    kernel_size, stride, padding, dilation = 2, 2, 0, 1
    batch_size, channels, npoints = 2, 4, 32

    key = jax.random.PRNGKey(0)
    kf, kc = jax.random.split(key, 2)

    D = H = W = shape
    # Unique active voxel coordinates per batch element.
    lin = jax.random.choice(kc, D * H * W, shape=(batch_size, npoints), replace=False)
    z = (lin // (H * W)).reshape(-1)
    y = ((lin // W) % H).reshape(-1)
    xw = (lin % W).reshape(-1)
    b_idx = jnp.repeat(jnp.arange(batch_size), npoints)
    coors = jnp.stack([b_idx, z, y, xw], axis=1).astype(jnp.int32)   # (N, 4)
    features = jax.random.normal(kf, (batch_size * npoints, channels), dtype=jnp.float32)

    model = SparseMaxPoolTestPallas(num_layers, ndim, shape, kernel_size,
                                    stride, padding, dilation)
    out = model(features, coors, batch_size)
    jax.block_until_ready(out)

    # out shape: (2, 4, 2, 2, 2) == (B, C, D/4, H/4, W/4) after two k=2,s=2 pools
    assert out.shape == (batch_size, channels, 2, 2, 2), out.shape

    ref = _reference_forward(features, coors, batch_size, (D, H, W),
                             num_layers, kernel_size, stride, padding, dilation)
    jax.block_until_ready(ref)
    assert bool(jnp.allclose(out, ref, atol=1e-6)), "mismatch vs reduce_window reference"

    print("KERNEL_OK")
</pallas_src>

<mosaic_0001>
module attributes {stable_mosaic.version = 11 : i64} {
  func.func @_fused_sparse_maxpool_kernel(%arg0: i32, %arg1: memref<3xi32, #tpu.memory_space<smem>>, %arg2: memref<64xi32, #tpu.memory_space<smem>>, %arg3: memref<64xi32, #tpu.memory_space<smem>>, %arg4: memref<64xi32, #tpu.memory_space<smem>>, %arg5: memref<64x4xf32, #tpu.memory_space<vmem>>, %arg6: memref<1x2x2x2x4xf32, #tpu.memory_space<vmem>>, %arg7: memref<9x9x9x4xf32, #tpu.memory_space<vmem>>, %arg8: memref<5x5x5x4xf32, #tpu.memory_space<vmem>>) attributes {dimension_semantics = [#tpu.dimension_semantics<parallel>], iteration_bounds = array<i64: 2>, scalar_prefetch = 4 : i64, scratch_operands = 2 : i64, tpu.core_type = #tpu.core_type<tc>, window_params = [{pipeline_mode = #tpu.pipeline_mode<synchronous>, transform_indices = @transform_0, window_bounds = array<i64: 64, 4>}, {transform_indices = @transform_1, window_bounds = array<i64: 1, 2, 2, 2, 4>}]} {
    %cst = arith.constant 0xFF800000 : f32
    %0 = vector.broadcast %cst : f32 to vector<9x9x9x4xf32>
    %c0 = arith.constant 0 : index
    %c0_0 = arith.constant 0 : index
    %c0_1 = arith.constant 0 : index
    %c0_2 = arith.constant 0 : index
    %1 = vector.load %arg7[%c0, %c0_0, %c0_1, %c0_2] : memref<9x9x9x4xf32, #tpu.memory_space<vmem>>, vector<9x9x9x4xf32>
    tpu.vector_store %arg7[%c0, %c0_0, %c0_1, %c0_2], %0 {strides = array<i32>} : memref<9x9x9x4xf32, #tpu.memory_space<vmem>>, vector<9x9x9x4xf32>,
    %2 = tpu.iota {dimensions = array<i32: 2>} : vector<1x1x9x4xi32>
    %3 = arith.index_cast %arg0 : i32 to index
    %4 = memref.load %arg1[%3] : memref<3xi32, #tpu.memory_space<smem>>
    %c1_i32 = arith.constant 1 : i32
    %5 = arith.addi %arg0, %c1_i32 : i32
    %6 = arith.index_cast %5 : i32 to index
    %7 = memref.load %arg1[%6] : memref<3xi32, #tpu.memory_space<smem>>
    %c0_i32 = arith.constant 0 : i32
    %8 = arith.subi %7, %4 : i32
    %9 = arith.addi %4, %8 : i32
    %c1_i32_3 = arith.constant 1 : i32
    scf.for %arg9 = %4 to %9 step %c1_i32_3  : i32 {
      %60 = arith.index_cast %arg9 : i32 to index
      %61 = memref.load %arg2[%60] : memref<64xi32, #tpu.memory_space<smem>>
      %c0_i32_30 = arith.constant 0 : i32
      %62 = arith.addi %61, %c0_i32_30 : i32
      %63 = arith.index_cast %arg9 : i32 to index
      %64 = memref.load %arg3[%63] : memref<64xi32, #tpu.memory_space<smem>>
      %c0_i32_31 = arith.constant 0 : i32
      %65 = arith.addi %64, %c0_i32_31 : i32
      %66 = arith.index_cast %arg9 : i32 to index
      %67 = memref.load %arg4[%66] : memref<64xi32, #tpu.memory_space<smem>>
      %c0_i32_32 = arith.constant 0 : i32
      %68 = arith.addi %67, %c0_i32_32 : i32
      %69 = arith.index_cast %arg9 : i32 to index
      %c0_33 = arith.constant 0 : index
      %70 = vector.load %arg5[%69, %c0_33] : memref<64x4xf32, #tpu.memory_space<vmem>>, vector<1x4xf32>
      %71 = vector.shape_cast %70 : vector<1x4xf32> to vector<1x1x1x4xf32>
      %72 = arith.index_cast %62 : i32 to index
      %73 = arith.index_cast %65 : i32 to index
      %c0_34 = arith.constant 0 : index
      %c0_35 = arith.constant 0 : index
      %74 = vector.load %arg7[%72, %73, %c0_34, %c0_35] : memref<9x9x9x4xf32, #tpu.memory_space<vmem>>, vector<1x1x9x4xf32>
      %75 = vector.broadcast %68 : i32 to vector<1x1x9x4xi32>
      %76 = arith.cmpi eq, %2, %75 : vector<1x1x9x4xi32>
      %77 = vector.shape_cast %71 : vector<1x1x1x4xf32> to vector<1x1x1x4xf32>
      %78 = vector.broadcast %77 : vector<1x1x1x4xf32> to vector<1x1x9x4xf32>
      %79 = arith.select %76, %78, %74 : vector<1x1x9x4xi1>, vector<1x1x9x4xf32>
      %80 = arith.index_cast %62 : i32 to index
      %81 = arith.index_cast %65 : i32 to index
      %c0_36 = arith.constant 0 : index
      %c0_37 = arith.constant 0 : index
      %82 = vector.load %arg7[%80, %81, %c0_36, %c0_37] : memref<9x9x9x4xf32, #tpu.memory_space<vmem>>, vector<1x1x9x4xf32>
      tpu.vector_store %arg7[%80, %81, %c0_36, %c0_37], %79 {strides = array<i32>} : memref<9x9x9x4xf32, #tpu.memory_space<vmem>>, vector<1x1x9x4xf32>,
    }
    %c0_4 = arith.constant 0 : index
    %c0_5 = arith.constant 0 : index
    %c0_6 = arith.constant 0 : index
    %c0_7 = arith.constant 0 : index
    %10 = tpu.strided_load %arg7[%c0_4, %c0_5, %c0_6, %c0_7] {strides = array<i32: 1, 1, 2, 1>} : memref<9x9x9x4xf32, #tpu.memory_space<vmem>>, vector<9x9x4x4xf32>
    %c0_8 = arith.constant 0 : index
    %c0_9 = arith.constant 0 : index
    %c1 = arith.constant 1 : index
    %c0_10 = arith.constant 0 : index
    %11 = tpu.strided_load %arg7[%c0_8, %c0_9, %c1, %c0_10] {strides = array<i32: 1, 1, 2, 1>} : memref<9x9x9x4xf32, #tpu.memory_space<vmem>>, vector<9x9x4x4xf32>
    %12 = arith.maximumf %10, %11 : vector<9x9x4x4xf32>
    %13 = vector.extract_strided_slice %12 {offsets = [0, 0, 0, 0], sizes = [9, 8, 4, 4], strides = [1, 1, 1, 1]} : vector<9x9x4x4xf32> to vector<9x8x4x4xf32>
    %14 = vector.shape_cast %13 : vector<9x8x4x4xf32> to vector<9x4x2x4x4xf32>
    %15 = vector.extract_strided_slice %14 {offsets = [0, 0, 0, 0, 0], sizes = [9, 4, 1, 4, 4], strides = [1, 1, 1, 1, 1]} : vector<9x4x2x4x4xf32> to vector<9x4x1x4x4xf32>
    %16 = vector.shape_cast %15 : vector<9x4x1x4x4xf32> to vector<9x4x4x4xf32>
    %17 = vector.extract_strided_slice %12 {offsets = [0, 1, 0, 0], sizes = [9, 8, 4, 4], strides = [1, 1, 1, 1]} : vector<9x9x4x4xf32> to vector<9x8x4x4xf32>
    %18 = vector.shape_cast %17 : vector<9x8x4x4xf32> to vector<9x4x2x4x4xf32>
    %19 = vector.extract_strided_slice %18 {offsets = [0, 0, 0, 0, 0], sizes = [9, 4, 1, 4, 4], strides = [1, 1, 1, 1, 1]} : vector<9x4x2x4x4xf32> to vector<9x4x1x4x4xf32>
    %20 = vector.shape_cast %19 : vector<9x4x1x4x4xf32> to vector<9x4x4x4xf32>
    %21 = arith.maximumf %16, %20 : vector<9x4x4x4xf32>
    %22 = vector.extract_strided_slice %21 {offsets = [0, 0, 0, 0], sizes = [8, 4, 4, 4], strides = [1, 1, 1, 1]} : vector<9x4x4x4xf32> to vector<8x4x4x4xf32>
    %23 = vector.shape_cast %22 : vector<8x4x4x4xf32> to vector<4x2x4x4x4xf32>
    %24 = vector.extract_strided_slice %23 {offsets = [0, 0, 0, 0, 0], sizes = [4, 1, 4, 4, 4], strides = [1, 1, 1, 1, 1]} : vector<4x2x4x4x4xf32> to vector<4x1x4x4x4xf32>
    %25 = vector.shape_cast %24 : vector<4x1x4x4x4xf32> to vector<4x4x4x4xf32>
    %26 = vector.extract_strided_slice %21 {offsets = [1, 0, 0, 0], sizes = [8, 4, 4, 4], strides = [1, 1, 1, 1]} : vector<9x4x4x4xf32> to vector<8x4x4x4xf32>
    %27 = vector.shape_cast %26 : vector<8x4x4x4xf32> to vector<4x2x4x4x4xf32>
    %28 = vector.extract_strided_slice %27 {offsets = [0, 0, 0, 0, 0], sizes = [4, 1, 4, 4, 4], strides = [1, 1, 1, 1, 1]} : vector<4x2x4x4x4xf32> to vector<4x1x4x4x4xf32>
    %29 = vector.shape_cast %28 : vector<4x1x4x4x4xf32> to vector<4x4x4x4xf32>
    %30 = arith.maximumf %25, %29 : vector<4x4x4x4xf32>
    %c0_11 = arith.constant 0 : index
    %c0_12 = arith.constant 0 : index
    %c0_13 = arith.constant 0 : index
    %c0_14 = arith.constant 0 : index
    %31 = vector.load %arg8[%c0_11, %c0_12, %c0_13, %c0_14] : memref<5x5x5x4xf32, #tpu.memory_space<vmem>>, vector<4x4x4x4xf32>
    tpu.vector_store %arg8[%c0_11, %c0_12, %c0_13, %c0_14], %30 {strides = array<i32>} : memref<5x5x5x4xf32, #tpu.memory_space<vmem>>, vector<4x4x4x4xf32>,
    %c0_15 = arith.constant 0 : index
    %c0_16 = arith.constant 0 : index
    %c0_17 = arith.constant 0 : index
    %c0_18 = arith.constant 0 : index
    %32 = tpu.strided_load %arg8[%c0_15, %c0_16, %c0_17, %c0_18] {strides = array<i32: 1, 1, 2, 1>} : memref<5x5x5x4xf32, #tpu.memory_space<vmem>>, vector<5x5x2x4xf32>
    %c0_19 = arith.constant 0 : index
    %c0_20 = arith.constant 0 : index
    %c1_21 = arith.constant 1 : index
    %c0_22 = arith.constant 0 : index
    %33 = tpu.strided_load %arg8[%c0_19, %c0_20, %c1_21, %c0_22] {strides = array<i32: 1, 1, 2, 1>} : memref<5x5x5x4xf32, #tpu.memory_space<vmem>>, vector<5x5x2x4xf32>
    %34 = arith.maximumf %32, %33 : vector<5x5x2x4xf32>
    %35 = vector.extract_strided_slice %34 {offsets = [0, 0, 0, 0], sizes = [5, 4, 2, 4], strides = [1, 1, 1, 1]} : vector<5x5x2x4xf32> to vector<5x4x2x4xf32>
    %36 = vector.shape_cast %35 : vector<5x4x2x4xf32> to vector<5x2x2x2x4xf32>
    %37 = vector.extract_strided_slice %36 {offsets = [0, 0, 0, 0, 0], sizes = [5, 2, 1, 2, 4], strides = [1, 1, 1, 1, 1]} : vector<5x2x2x2x4xf32> to vector<5x2x1x2x4xf32>
    %38 = vector.shape_cast %37 : vector<5x2x1x2x4xf32> to vector<5x2x2x4xf32>
    %39 = vector.extract_strided_slice %34 {offsets = [0, 1, 0, 0], sizes = [5, 4, 2, 4], strides = [1, 1, 1, 1]} : vector<5x5x2x4xf32> to vector<5x4x2x4xf32>
    %40 = vector.shape_cast %39 : vector<5x4x2x4xf32> to vector<5x2x2x2x4xf32>
    %41 = vector.extract_strided_slice %40 {offsets = [0, 0, 0, 0, 0], sizes = [5, 2, 1, 2, 4], strides = [1, 1, 1, 1, 1]} : vector<5x2x2x2x4xf32> to vector<5x2x1x2x4xf32>
    %42 = vector.shape_cast %41 : vector<5x2x1x2x4xf32> to vector<5x2x2x4xf32>
    %43 = arith.maximumf %38, %42 : vector<5x2x2x4xf32>
    %44 = vector.extract_strided_slice %43 {offsets = [0, 0, 0, 0], sizes = [4, 2, 2, 4], strides = [1, 1, 1, 1]} : vector<5x2x2x4xf32> to vector<4x2x2x4xf32>
    %45 = vector.shape_cast %44 : vector<4x2x2x4xf32> to vector<2x2x2x2x4xf32>
    %46 = vector.extract_strided_slice %45 {offsets = [0, 0, 0, 0, 0], sizes = [2, 1, 2, 2, 4], strides = [1, 1, 1, 1, 1]} : vector<2x2x2x2x4xf32> to vector<2x1x2x2x4xf32>
    %47 = vector.shape_cast %46 : vector<2x1x2x2x4xf32> to vector<2x2x2x4xf32>
    %48 = vector.extract_strided_slice %43 {offsets = [1, 0, 0, 0], sizes = [4, 2, 2, 4], strides = [1, 1, 1, 1]} : vector<5x2x2x4xf32> to vector<4x2x2x4xf32>
    %49 = vector.shape_cast %48 : vector<4x2x2x4xf32> to vector<2x2x2x2x4xf32>
    %50 = vector.extract_strided_slice %49 {offsets = [0, 0, 0, 0, 0], sizes = [2, 1, 2, 2, 4], strides = [1, 1, 1, 1, 1]} : vector<2x2x2x2x4xf32> to vector<2x1x2x2x4xf32>
    %51 = vector.shape_cast %50 : vector<2x1x2x2x4xf32> to vector<2x2x2x4xf32>
    %52 = arith.maximumf %47, %51 : vector<2x2x2x4xf32>
    %cst_23 = arith.constant 0xFF800000 : f32
    %53 = vector.broadcast %cst_23 : f32 to vector<2x2x2x4xf32>
    %54 = arith.cmpf oeq, %52, %53 : vector<2x2x2x4xf32>
    %cst_24 = arith.constant 0.000000e+00 : f32
    %55 = vector.broadcast %cst_24 : f32 to vector<2x2x2x4xf32>
    %56 = arith.select %54, %55, %52 : vector<2x2x2x4xi1>, vector<2x2x2x4xf32>
    %c0_25 = arith.constant 0 : index
    %c0_26 = arith.constant 0 : index
    %c0_27 = arith.constant 0 : index
    %c0_28 = arith.constant 0 : index
    %c0_29 = arith.constant 0 : index
    %57 = vector.load %arg6[%c0_25, %c0_26, %c0_27, %c0_28, %c0_29] : memref<1x2x2x2x4xf32, #tpu.memory_space<vmem>>, vector<1x2x2x2x4xf32>
    %58 = vector.shape_cast %57 : vector<1x2x2x2x4xf32> to vector<2x2x2x4xf32>
    %59 = vector.shape_cast %56 : vector<2x2x2x4xf32> to vector<1x2x2x2x4xf32>
    tpu.vector_store %arg6[%c0_25, %c0_26, %c0_27, %c0_28, %c0_29], %59 {strides = array<i32>} : memref<1x2x2x2x4xf32, #tpu.memory_space<vmem>>, vector<1x2x2x2x4xf32>,
    return
  }
  func.func @transform_0(%arg0: i32, %arg1: memref<3xi32, #tpu.memory_space<smem>>, %arg2: memref<64xi32, #tpu.memory_space<smem>>, %arg3: memref<64xi32, #tpu.memory_space<smem>>, %arg4: memref<64xi32, #tpu.memory_space<smem>>) -> (i32, i32) {
    %c0_i32 = arith.constant 0 : i32
    %c0_i32_0 = arith.constant 0 : i32
    %c0_i32_1 = arith.constant 0 : i32
    return %c0_i32, %c0_i32_0 : i32, i32
  }
  func.func @transform_1(%arg0: i32, %arg1: memref<3xi32, #tpu.memory_space<smem>>, %arg2: memref<64xi32, #tpu.memory_space<smem>>, %arg3: memref<64xi32, #tpu.memory_space<smem>>, %arg4: memref<64xi32, #tpu.memory_space<smem>>) -> (i32, i32, i32, i32, i32) {
    %c0_i32 = arith.constant 0 : i32
    %c0_i32_0 = arith.constant 0 : i32
    %c0_i32_1 = arith.constant 0 : i32
    %c0_i32_2 = arith.constant 0 : i32
    %c0_i32_3 = arith.constant 0 : i32
    return %arg0, %c0_i32, %c0_i32_0, %c0_i32_1, %c0_i32_2 : i32, i32, i32, i32, i32
  }
}

</mosaic_0001>

<bundles_post_ra>
// kernel: tpu_custom_call.1
= control target key start
LH: loop header
LB: loop body
LE: loop exit
PB: predicated region body
PF: predicated region fallthrough
CT: control target
= control target key end

     0   :  { %s1069_s24 = smov [#allocation5]   ;;  %s1070_s25 = smov [#allocation6]   ;;  %s1575_s0 = inlined_call_operand.vmem [shape: s32[3], index: 0, kind: input, shape index: {}]   ;;  %s1576_s4 = inlined_call_operand.vmem [shape: f32[64,4], index: 4, kind: input, shape index: {}]   ;;  %s1577_s5 = inlined_call_operand.hbm [shape: f32[2,2,2,2,4], index: 5, kind: output, shape index: {}]   ;;  %s1578_s1 = inlined_call_operand.vmem [shape: s32[64], index: 1, kind: input, shape index: {}]   ;;  %s1579_s2 = inlined_call_operand.vmem [shape: s32[64], index: 2, kind: input, shape index: {}]   ;;  %s1580_s3 = inlined_call_operand.vmem [shape: s32[64], index: 3, kind: input, shape index: {}]  }
   0x1   :  { %s11_s20 = sshll.u32 %s1575_s0, 4  ;;  %s16_s23 = sshll.u32 %s1578_s1, 4  ;;  %s12_s20 = int_to_ptr.vmem [resolvable:$true] %s11_s20  ;;  %s17_s23 = int_to_ptr.vmem [resolvable:$true] %s16_s23 }
   0x2   :  { %14 = dma.vmem_to_smem %s12_s20, 16, %s1069_s24, [#allocation4] }
   0x3   :  { %19 = dma.vmem_to_smem %s17_s23, 16, %s1070_s25, [#allocation4] }
   0x4   :  { %s21_s28 = sshll.u32 %s1579_s2, 4  ;;  %s26_s6 = sshll.u32 %s1580_s3, 4  ;;  %s22_s28 = int_to_ptr.vmem [resolvable:$true] %s21_s28  ;;  %s27_s6 = int_to_ptr.vmem [resolvable:$true] %s26_s6 }
   0x5   :  { %s1071_s0 = smov [#allocation7]   ;;  %s1072_s7 = smov [#allocation8]  }
   0x6   :  { %24 = dma.vmem_to_smem %s22_s28, 16, %s1071_s0, [#allocation4] }
   0x7   :  { %29 = dma.vmem_to_smem %s27_s6, 16, %s1072_s7, [#allocation4] }
   0x8   :  { %1043 = dma.done.wait [#allocation4], 64 }
   0x9   :  { %1044 = vsyncadd [#allocation4], 4294967232 }
   0xa   :  { %32 = sfence }
   0xb   :  { %33 = vsyncpa [#allocation10], 0 }
   0xc   :  { %35 = vsyncpa [#allocation10 + $0x1], 0  ;;  %s1118_s1 = smov 0   ;;  %s1120_s8 = smov 0  }
   0xd   :  { %s1122_s2 = smov 0   ;;  %s1124_s9 = smov 0  }
   0xe LB: > { %s1139_s3 = sadd.s32 4294967295, %s1063_s9   ;;  %s881_s10 = sadd.s32 4294967294, %s1063_s9   ;;  %s1063_s9 = sphi %s1124_s9, %s1586_s9   ;;  %s1059_s2 = sphi %s1122_s2, %s1585_s2   ;;  %s1055_s8 = sphi %s1120_s8, %s1584_s8   ;;  %s1051_s1 = sphi %s1118_s1, %s1583_s1  }
   0xf   : > { %s1143_s11 = sadd.s32 1, %s1063_s9   ;;  %s69_s12 = sadd.s32 1, %s1059_s2 }
  0x10   : > { %s66_s13 = ssub.s32 %s1063_s9, %s1143_s11  ;;  %p79_p0 = scmp.ne.s32.totalorder %s1059_s2, %s1055_s8 }
  0x11   : > { %p67_p1 = scmp.eq.s32.totalorder %s66_s13, 0  ;;  %p80_p2 = scmp.eq.s32.totalorder %s1139_s3, 1 }
  0x12   : > { %p85_p3 = scmp.ne.s32.totalorder %s1055_s8, %s1051_s1  ;;  %p86_p4 = scmp.eq.s32.totalorder %s881_s10, 1 }
  0x13   : > { %s1154_s14 = scalar_select %p67_p1, %s1059_s2, %s69_s12  }
  0x14   : > { %p1156_p5 = por %p80_p2, %p79_p0  ;;  %p1160_p6 = por %p86_p4, %p85_p3 }
  0x15   : > { %p883_p7 = scmp.ge.s32.totalorder %s1063_s9, 1  ;;  %p107_p8 = scmp.lt.s32.totalorder %s1063_s9, 3 }
  0x17   : > { %p108_p9 = pnand %p883_p7, %p107_p8 }
  0x18   : > { %s119_s17 = sand.u32 (!%p108_p9), 1, %s1055_s8   ;;  %s290_s19 = sadd.s32 (!%p108_p9), 1, %s1139_s3 }
  0x19   : > { %111 = sbr.rel (%p108_p9) target bundleno = 316 (0x13c), region = 24  ;;  %s1169_s18 = sshll.u32 (!%p108_p9), %s119_s17, 3 }
  0x1a   : > { %s1241_s20 = sld [smem:[#allocation5 + %s1139_s3]] (!%p108_p9)   ;;  %s1505_s22 = scalar_lea.vmem (!%p108_p9), [#allocation9], %s1169_s18 }
  0x1b   : > { %s1245_s21 = sld [smem:[#allocation5 + %s290_s19]] (!%p108_p9) }
  0x1e   : > { %vm122_vm0 = vcmask 31744   ;;  %v1073_v0 = vmov -inf   ;;  %vm124_vm1 = vcmask 24576   ;;  %v286_v1 = vlaneseq }
  0x1f   : > { %123 = vst.msk [vmem:[#allocation2] sm:$0xff] %vm122_vm0, %v1073_v0 }
  0x20   : > { %126 = vst.msk [vmem:[#allocation2 + $0x10] sm:$0xff] %vm122_vm0, %v1073_v0  ;;  %v1433_v2 = vshrl.u32 %v286_v1, 7 }
  0x21   : > { %128 = vst.msk [vmem:[#allocation2 + $0x20] sm:$0xff] %vm122_vm0, %v1073_v0  ;;  %p862_p10 = scmp.ge.s32.totalorder %s1241_s20, %s1245_s21 }
  0x22   : > { %130 = vst.msk [vmem:[#allocation2 + $0x30] sm:$0xff] %vm122_vm0, %v1073_v0  ;;  %v288_v3 = vadd.s32 8, %v1433_v2  ;;  %s1065_s23 = smov (!%p862_p10), %s1241_s20  }
  0x23   : > { %132 = vst.msk [vmem:[#allocation2 + $0x40] sm:$0xff] %vm122_vm0, %v1073_v0 }
  0x24   : > { %134 = vst.msk [vmem:[#allocation2 + $0x50] sm:$0xff] %vm122_vm0, %v1073_v0 }
  0x25   : > { %136 = vst.msk [vmem:[#allocation2 + $0x60] sm:$0xff] %vm122_vm0, %v1073_v0 }
  0x26   : > { %138 = vst.msk [vmem:[#allocation2 + $0x70] sm:$0xff] %vm122_vm0, %v1073_v0 }
  0x27   : > { %140 = vst.msk [vmem:[#allocation2 + $0x80] sm:$0xff] %vm122_vm0, %v1073_v0 }
  0x28   : > { %142 = vst.msk [vmem:[#allocation2 + $0x90] sm:$0xff] %vm122_vm0, %v1073_v0 }
  0x29   : > { %144 = vst.msk [vmem:[#allocation2 + $0xa0] sm:$0xff] %vm122_vm0, %v1073_v0 }
  0x2a   : > { %146 = vst.msk [vmem:[#allocation2 + $0xb0] sm:$0xff] %vm122_vm0, %v1073_v0 }
  0x2b   : > { %148 = vst.msk [vmem:[#allocation2 + $0xc0] sm:$0xff] %vm122_vm0, %v1073_v0 }
  0x2c   : > { %150 = vst.msk [vmem:[#allocation2 + $0xd0] sm:$0xff] %vm122_vm0, %v1073_v0 }
  0x2d   : > { %152 = vst.msk [vmem:[#allocation2 + $0xe0] sm:$0xff] %vm122_vm0, %v1073_v0 }
  0x2e   : > { %154 = vst.msk [vmem:[#allocation2 + $0xf0] sm:$0xff] %vm122_vm0, %v1073_v0 }
  0x2f   : > { %156 = vst.msk [vmem:[#allocation2 + $0x100] sm:$0xff] %vm122_vm0, %v1073_v0 }
  0x30   : > { %158 = vst.msk [vmem:[#allocation2 + $0x110] sm:$0xff] %vm122_vm0, %v1073_v0 }
  0x31   : > { %160 = vst.msk [vmem:[#allocation2 + $0x120] sm:$0xff] %vm122_vm0, %v1073_v0 }
  0x32   : > { %162 = vst.msk [vmem:[#allocation2 + $0x130] sm:$0xff] %vm122_vm0, %v1073_v0 }
  0x33   : > { %164 = vst.msk [vmem:[#allocation2 + $0x140] sm:$0xff] %vm122_vm0, %v1073_v0 }
  0x34   : > { %166 = vst.msk [vmem:[#allocation2 + $0x150] sm:$0xff] %vm122_vm0, %v1073_v0 }
  0x35   : > { %168 = vst.msk [vmem:[#allocation2 + $0x160] sm:$0xff] %vm122_vm0, %v1073_v0 }
  0x36   : > { %170 = vst.msk [vmem:[#allocation2 + $0x170] sm:$0xff] %vm122_vm0, %v1073_v0 }
  0x37   : > { %172 = vst.msk [vmem:[#allocation2 + $0x180] sm:$0xff] %vm122_vm0, %v1073_v0 }
  0x38   : > { %174 = vst.msk [vmem:[#allocation2 + $0x190] sm:$0xff] %vm122_vm0, %v1073_v0 }
  0x39   : > { %176 = vst.msk [vmem:[#allocation2 + $0x1a0] sm:$0xff] %vm122_vm0, %v1073_v0 }
  0x3a   : > { %178 = vst.msk [vmem:[#allocation2 + $0x1b0] sm:$0xff] %vm122_vm0, %v1073_v0 }
  0x3b   : > { %180 = vst.msk [vmem:[#allocation2 + $0x1c0] sm:$0xff] %vm122_vm0, %v1073_v0 }
  0x3c   : > { %182 = vst.msk [vmem:[#allocation2 + $0x1d0] sm:$0xff] %vm122_vm0, %v1073_v0 }
  0x3d   : > { %184 = vst.msk [vmem:[#allocation2 + $0x1e0] sm:$0xff] %vm122_vm0, %v1073_v0 }
  0x3e   : > { %186 = vst.msk [vmem:[#allocation2 + $0x1f0] sm:$0xff] %vm122_vm0, %v1073_v0 }
  0x3f   : > { %188 = vst.msk [vmem:[#allocation2 + $0x200] sm:$0xff] %vm122_vm0, %v1073_v0 }
  0x40   : > { %190 = vst.msk [vmem:[#allocation2 + $0x210] sm:$0xff] %vm122_vm0, %v1073_v0 }
  0x41   : > { %192 = vst.msk [vmem:[#allocation2 + $0x220] sm:$0xff] %vm122_vm0, %v1073_v0 }
  0x42   : > { %194 = vst.msk [vmem:[#allocation2 + $0x230] sm:$0xff] %vm122_vm0, %v1073_v0 }
  0x43   : > { %196 = vst.msk [vmem:[#allocation2 + $0x240] sm:$0xff] %vm122_vm0, %v1073_v0 }
  0x44   : > { %198 = vst.msk [vmem:[#allocation2 + $0x250] sm:$0xff] %vm122_vm0, %v1073_v0 }
  0x45   : > { %200 = vst.msk [vmem:[#allocation2 + $0x260] sm:$0xff] %vm122_vm0, %v1073_v0 }
  0x46   : > { %202 = vst.msk [vmem:[#allocation2 + $0x270] sm:$0xff] %vm122_vm0, %v1073_v0 }
  0x47   : > { %204 = vst.msk [vmem:[#allocation2 + $0x280] sm:$0xff] %vm122_vm0, %v1073_v0 }
  0x48   : > { %206 = vst.msk [vmem:[#allocation2 + $0x290] sm:$0xff] %vm122_vm0, %v1073_v0 }
  0x49   : > { %208 = vst.msk [vmem:[#allocation2 + $0x2a0] sm:$0xff] %vm122_vm0, %v1073_v0 }
  0x4a   : > { %210 = vst.msk [vmem:[#allocation2 + $0x2b0] sm:$0xff] %vm122_vm0, %v1073_v0 }
  0x4b   : > { %212 = vst.msk [vmem:[#allocation2 + $0x2c0] sm:$0xff] %vm122_vm0, %v1073_v0 }
  0x4c   : > { %214 = vst.msk [vmem:[#allocation2 + $0x2d0] sm:$0xff] %vm122_vm0, %v1073_v0 }
  0x4d   : > { %216 = vst.msk [vmem:[#allocation2 + $0x2e0] sm:$0xff] %vm122_vm0, %v1073_v0 }
  0x4e   : > { %218 = vst.msk [vmem:[#allocation2 + $0x2f0] sm:$0xff] %vm122_vm0, %v1073_v0 }
  0x4f   : > { %220 = vst.msk [vmem:[#allocation2 + $0x300] sm:$0xff] %vm122_vm0, %v1073_v0 }
  0x50   : > { %222 = vst.msk [vmem:[#allocation2 + $0x310] sm:$0xff] %vm122_vm0, %v1073_v0 }
  0x51   : > { %224 = vst.msk [vmem:[#allocation2 + $0x320] sm:$0xff] %vm122_vm0, %v1073_v0 }
  0x52   : > { %226 = vst.msk [vmem:[#allocation2 + $0x330] sm:$0xff] %vm122_vm0, %v1073_v0 }
  0x53   : > { %228 = vst.msk [vmem:[#allocation2 + $0x340] sm:$0xff] %vm122_vm0, %v1073_v0 }
  0x54   : > { %230 = vst.msk [vmem:[#allocation2 + $0x350] sm:$0xff] %vm122_vm0, %v1073_v0 }
  0x55   : > { %232 = vst.msk [vmem:[#allocation2 + $0x360] sm:$0xff] %vm122_vm0, %v1073_v0 }
  0x56   : > { %234 = vst.msk [vmem:[#allocation2 + $0x370] sm:$0xff] %vm122_vm0, %v1073_v0 }
  0x57   : > { %236 = vst.msk [vmem:[#allocation2 + $0x380] sm:$0xff] %vm122_vm0, %v1073_v0 }
  0x58   : > { %238 = vst.msk [vmem:[#allocation2 + $0x390] sm:$0xff] %vm122_vm0, %v1073_v0 }
  0x59   : > { %240 = vst.msk [vmem:[#allocation2 + $0x3a0] sm:$0xff] %vm122_vm0, %v1073_v0 }
  0x5a   : > { %242 = vst.msk [vmem:[#allocation2 + $0x3b0] sm:$0xff] %vm122_vm0, %v1073_v0 }
  0x5b   : > { %244 = vst.msk [vmem:[#allocation2 + $0x3c0] sm:$0xff] %vm122_vm0, %v1073_v0 }
  0x5c   : > { %246 = vst.msk [vmem:[#allocation2 + $0x3d0] sm:$0xff] %vm122_vm0, %v1073_v0 }
  0x5d   : > { %248 = vst.msk [vmem:[#allocation2 + $0x3e0] sm:$0xff] %vm122_vm0, %v1073_v0 }
  0x5e   : > { %250 = vst.msk [vmem:[#allocation2 + $0x3f0] sm:$0xff] %vm122_vm0, %v1073_v0 }
  0x5f   : > { %252 = vst.msk [vmem:[#allocation2 + $0x400] sm:$0xff] %vm122_vm0, %v1073_v0 }
  0x60   : > { %254 = vst.msk [vmem:[#allocation2 + $0x410] sm:$0xff] %vm122_vm0, %v1073_v0 }
  0x61   : > { %256 = vst.msk [vmem:[#allocation2 + $0x420] sm:$0xff] %vm122_vm0, %v1073_v0 }
  0x62   : > { %258 = vst.msk [vmem:[#allocation2 + $0x430] sm:$0xff] %vm122_vm0, %v1073_v0 }
  0x63   : > { %260 = vst.msk [vmem:[#allocation2 + $0x440] sm:$0xff] %vm122_vm0, %v1073_v0 }
  0x64   : > { %262 = vst.msk [vmem:[#allocation2 + $0x450] sm:$0xff] %vm122_vm0, %v1073_v0 }
  0x65   : > { %264 = vst.msk [vmem:[#allocation2 + $0x460] sm:$0xff] %vm122_vm0, %v1073_v0 }
  0x66   : > { %266 = vst.msk [vmem:[#allocation2 + $0x470] sm:$0xff] %vm122_vm0, %v1073_v0 }
  0x67   : > { %268 = vst.msk [vmem:[#allocation2 + $0x480] sm:$0xff] %vm122_vm0, %v1073_v0 }
  0x68   : > { %270 = vst.msk [vmem:[#allocation2 + $0x490] sm:$0xff] %vm122_vm0, %v1073_v0 }
  0x69   : > { %272 = vst.msk [vmem:[#allocation2 + $0x4a0] sm:$0xff] %vm122_vm0, %v1073_v0 }
  0x6a   : > { %274 = vst.msk [vmem:[#allocation2 + $0x4b0] sm:$0xff] %vm122_vm0, %v1073_v0 }
  0x6b   : > { %276 = vst.msk [vmem:[#allocation2 + $0x4c0] sm:$0xff] %vm122_vm0, %v1073_v0 }
  0x6c   : > { %278 = vst.msk [vmem:[#allocation2 + $0x4d0] sm:$0xff] %vm122_vm0, %v1073_v0 }
  0x6d   : > { %280 = vst.msk [vmem:[#allocation2 + $0x4e0] sm:$0xff] %vm122_vm0, %v1073_v0 }
  0x6e   : > { %282 = vst.msk [vmem:[#allocation2 + $0x4f0] sm:$0xff] %vm122_vm0, %v1073_v0 }
  0x6f   : > { %284 = vst.msk [vmem:[#allocation2 + $0x500] sm:$0xff] %vm122_vm0, %v1073_v0 }
  0x70   : > { %125 = vst.msk [vmem:[#allocation2 + $0x8] sm:$0x1] %vm124_vm1, %v1073_v0 }
  0x71   : > { %127 = vst.msk [vmem:[#allocation2 + $0x18] sm:$0x1] %vm124_vm1, %v1073_v0 }
  0x72   : > { %129 = vst.msk [vmem:[#allocation2 + $0x28] sm:$0x1] %vm124_vm1, %v1073_v0 }
  0x73   : > { %131 = vst.msk [vmem:[#allocation2 + $0x38] sm:$0x1] %vm124_vm1, %v1073_v0 }
  0x74   : > { %133 = vst.msk [vmem:[#allocation2 + $0x48] sm:$0x1] %vm124_vm1, %v1073_v0 }
  0x75   : > { %135 = vst.msk [vmem:[#allocation2 + $0x58] sm:$0x1] %vm124_vm1, %v1073_v0 }
  0x76   : > { %137 = vst.msk [vmem:[#allocation2 + $0x68] sm:$0x1] %vm124_vm1, %v1073_v0 }
  0x77   : > { %139 = vst.msk [vmem:[#allocation2 + $0x78] sm:$0x1] %vm124_vm1, %v1073_v0 }
  0x78   : > { %141 = vst.msk [vmem:[#allocation2 + $0x88] sm:$0x1] %vm124_vm1, %v1073_v0 }
  0x79   : > { %143 = vst.msk [vmem:[#allocation2 + $0x98] sm:$0x1] %vm124_vm1, %v1073_v0 }
  0x7a   : > { %145 = vst.msk [vmem:[#allocation2 + $0xa8] sm:$0x1] %vm124_vm1, %v1073_v0 }
  0x7b   : > { %147 = vst.msk [vmem:[#allocation2 + $0xb8] sm:$0x1] %vm124_vm1, %v1073_v0 }
  0x7c   : > { %149 = vst.msk [vmem:[#allocation2 + $0xc8] sm:$0x1] %vm124_vm1, %v1073_v0 }
  0x7d   : > { %151 = vst.msk [vmem:[#allocation2 + $0xd8] sm:$0x1] %vm124_vm1, %v1073_v0 }
  0x7e   : > { %153 = vst.msk [vmem:[#allocation2 + $0xe8] sm:$0x1] %vm124_vm1, %v1073_v0 }
  0x7f   : > { %155 = vst.msk [vmem:[#allocation2 + $0xf8] sm:$0x1] %vm124_vm1, %v1073_v0 }
  0x80   : > { %157 = vst.msk [vmem:[#allocation2 + $0x108] sm:$0x1] %vm124_vm1, %v1073_v0 }
  0x81   : > { %159 = vst.msk [vmem:[#allocation2 + $0x118] sm:$0x1] %vm124_vm1, %v1073_v0 }
  0x82   : > { %161 = vst.msk [vmem:[#allocation2 + $0x128] sm:$0x1] %vm124_vm1, %v1073_v0 }
  0x83   : > { %163 = vst.msk [vmem:[#allocation2 + $0x138] sm:$0x1] %vm124_vm1, %v1073_v0 }
  0x84   : > { %165 = vst.msk [vmem:[#allocation2 + $0x148] sm:$0x1] %vm124_vm1, %v1073_v0 }
  0x85   : > { %167 = vst.msk [vmem:[#allocation2 + $0x158] sm:$0x1] %vm124_vm1, %v1073_v0 }
  0x86   : > { %169 = vst.msk [vmem:[#allocation2 + $0x168] sm:$0x1] %vm124_vm1, %v1073_v0 }
  0x87   : > { %171 = vst.msk [vmem:[#allocation2 + $0x178] sm:$0x1] %vm124_vm1, %v1073_v0 }
  0x88   : > { %173 = vst.msk [vmem:[#allocation2 + $0x188] sm:$0x1] %vm124_vm1, %v1073_v0 }
  0x89   : > { %175 = vst.msk [vmem:[#allocation2 + $0x198] sm:$0x1] %vm124_vm1, %v1073_v0 }
  0x8a   : > { %177 = vst.msk [vmem:[#allocation2 + $0x1a8] sm:$0x1] %vm124_vm1, %v1073_v0 }
  0x8b   : > { %179 = vst.msk [vmem:[#allocation2 + $0x1b8] sm:$0x1] %vm124_vm1, %v1073_v0 }
  0x8c   : > { %181 = vst.msk [vmem:[#allocation2 + $0x1c8] sm:$0x1] %vm124_vm1, %v1073_v0 }
  0x8d   : > { %183 = vst.msk [vmem:[#allocation2 + $0x1d8] sm:$0x1] %vm124_vm1, %v1073_v0 }
  0x8e   : > { %185 = vst.msk [vmem:[#allocation2 + $0x1e8] sm:$0x1] %vm124_vm1, %v1073_v0 }
  0x8f   : > { %187 = vst.msk [vmem:[#allocation2 + $0x1f8] sm:$0x1] %vm124_vm1, %v1073_v0 }
  0x90   : > { %189 = vst.msk [vmem:[#allocation2 + $0x208] sm:$0x1] %vm124_vm1, %v1073_v0 }
  0x91   : > { %191 = vst.msk [vmem:[#allocation2 + $0x218] sm:$0x1] %vm124_vm1, %v1073_v0 }
  0x92   : > { %193 = vst.msk [vmem:[#allocation2 + $0x228] sm:$0x1] %vm124_vm1, %v1073_v0 }
  0x93   : > { %195 = vst.msk [vmem:[#allocation2 + $0x238] sm:$0x1] %vm124_vm1, %v1073_v0 }
  0x94   : > { %197 = vst.msk [vmem:[#allocation2 + $0x248] sm:$0x1] %vm124_vm1, %v1073_v0 }
  0x95   : > { %199 = vst.msk [vmem:[#allocation2 + $0x258] sm:$0x1] %vm124_vm1, %v1073_v0 }
  0x96   : > { %201 = vst.msk [vmem:[#allocation2 + $0x268] sm:$0x1] %vm124_vm1, %v1073_v0 }
  0x97   : > { %203 = vst.msk [vmem:[#allocation2 + $0x278] sm:$0x1] %vm124_vm1, %v1073_v0 }
  0x98   : > { %205 = vst.msk [vmem:[#allocation2 + $0x288] sm:$0x1] %vm124_vm1, %v1073_v0 }
  0x99   : > { %207 = vst.msk [vmem:[#allocation2 + $0x298] sm:$0x1] %vm124_vm1, %v1073_v0 }
  0x9a   : > { %209 = vst.msk [vmem:[#allocation2 + $0x2a8] sm:$0x1] %vm124_vm1, %v1073_v0 }
  0x9b   : > { %211 = vst.msk [vmem:[#allocation2 + $0x2b8] sm:$0x1] %vm124_vm1, %v1073_v0 }
  0x9c   : > { %213 = vst.msk [vmem:[#allocation2 + $0x2c8] sm:$0x1] %vm124_vm1, %v1073_v0 }
  0x9d   : > { %215 = vst.msk [vmem:[#allocation2 + $0x2d8] sm:$0x1] %vm124_vm1, %v1073_v0 }
  0x9e   : > { %217 = vst.msk [vmem:[#allocation2 + $0x2e8] sm:$0x1] %vm124_vm1, %v1073_v0 }
  0x9f   : > { %219 = vst.msk [vmem:[#allocation2 + $0x2f8] sm:$0x1] %vm124_vm1, %v1073_v0 }
  0xa0   : > { %221 = vst.msk [vmem:[#allocation2 + $0x308] sm:$0x1] %vm124_vm1, %v1073_v0 }
  0xa1   : > { %223 = vst.msk [vmem:[#allocation2 + $0x318] sm:$0x1] %vm124_vm1, %v1073_v0 }
  0xa2   : > { %225 = vst.msk [vmem:[#allocation2 + $0x328] sm:$0x1] %vm124_vm1, %v1073_v0 }
  0xa3   : > { %227 = vst.msk [vmem:[#allocation2 + $0x338] sm:$0x1] %vm124_vm1, %v1073_v0 }
  0xa4   : > { %229 = vst.msk [vmem:[#allocation2 + $0x348] sm:$0x1] %vm124_vm1, %v1073_v0 }
  0xa5   : > { %231 = vst.msk [vmem:[#allocation2 + $0x358] sm:$0x1] %vm124_vm1, %v1073_v0 }
  0xa6   : > { %233 = vst.msk [vmem:[#allocation2 + $0x368] sm:$0x1] %vm124_vm1, %v1073_v0 }
  0xa7   : > { %235 = vst.msk [vmem:[#allocation2 + $0x378] sm:$0x1] %vm124_vm1, %v1073_v0 }
  0xa8   : > { %237 = vst.msk [vmem:[#allocation2 + $0x388] sm:$0x1] %vm124_vm1, %v1073_v0 }
  0xa9   : > { %239 = vst.msk [vmem:[#allocation2 + $0x398] sm:$0x1] %vm124_vm1, %v1073_v0 }
  0xaa   : > { %241 = vst.msk [vmem:[#allocation2 + $0x3a8] sm:$0x1] %vm124_vm1, %v1073_v0 }
  0xab   : > { %243 = vst.msk [vmem:[#allocation2 + $0x3b8] sm:$0x1] %vm124_vm1, %v1073_v0 }
  0xac   : > { %245 = vst.msk [vmem:[#allocation2 + $0x3c8] sm:$0x1] %vm124_vm1, %v1073_v0 }
  0xad   : > { %247 = vst.msk [vmem:[#allocation2 + $0x3d8] sm:$0x1] %vm124_vm1, %v1073_v0 }
  0xae   : > { %249 = vst.msk [vmem:[#allocation2 + $0x3e8] sm:$0x1] %vm124_vm1, %v1073_v0 }
  0xaf   : > { %251 = vst.msk [vmem:[#allocation2 + $0x3f8] sm:$0x1] %vm124_vm1, %v1073_v0 }
  0xb0   : > { %253 = vst.msk [vmem:[#allocation2 + $0x408] sm:$0x1] %vm124_vm1, %v1073_v0 }
  0xb1   : > { %255 = vst.msk [vmem:[#allocation2 + $0x418] sm:$0x1] %vm124_vm1, %v1073_v0 }
  0xb2   : > { %257 = vst.msk [vmem:[#allocation2 + $0x428] sm:$0x1] %vm124_vm1, %v1073_v0 }
  0xb3   : > { %259 = vst.msk [vmem:[#allocation2 + $0x438] sm:$0x1] %vm124_vm1, %v1073_v0 }
  0xb4   : > { %261 = vst.msk [vmem:[#allocation2 + $0x448] sm:$0x1] %vm124_vm1, %v1073_v0 }
  0xb5   : > { %263 = vst.msk [vmem:[#allocation2 + $0x458] sm:$0x1] %vm124_vm1, %v1073_v0 }
  0xb6   : > { %265 = vst.msk [vmem:[#allocation2 + $0x468] sm:$0x1] %vm124_vm1, %v1073_v0 }
  0xb7   : > { %267 = vst.msk [vmem:[#allocation2 + $0x478] sm:$0x1] %vm124_vm1, %v1073_v0 }
  0xb8   : > { %269 = vst.msk [vmem:[#allocation2 + $0x488] sm:$0x1] %vm124_vm1, %v1073_v0 }
  0xb9   : > { %271 = vst.msk [vmem:[#allocation2 + $0x498] sm:$0x1] %vm124_vm1, %v1073_v0 }
  0xba   : > { %273 = vst.msk [vmem:[#allocation2 + $0x4a8] sm:$0x1] %vm124_vm1, %v1073_v0 }
  0xbb   : > { %275 = vst.msk [vmem:[#allocation2 + $0x4b8] sm:$0x1] %vm124_vm1, %v1073_v0 }
  0xbc   : > { %277 = vst.msk [vmem:[#allocation2 + $0x4c8] sm:$0x1] %vm124_vm1, %v1073_v0  ;;  %863 = sbr.rel (%p862_p10) target bundleno = 207 (0xcf), region = 217 }
  0xbd   : > { %279 = vst.msk [vmem:[#allocation2 + $0x4d8] sm:$0x1] %vm124_vm1, %v1073_v0 }
  0xbe   : > { %281 = vst.msk [vmem:[#allocation2 + $0x4e8] sm:$0x1] %vm124_vm1, %v1073_v0 }
  0xbf   : > { %283 = vst.msk [vmem:[#allocation2 + $0x4f8] sm:$0x1] %vm124_vm1, %v1073_v0 }
  0xc0   : > { %285 = vst.msk [vmem:[#allocation2 + $0x508] sm:$0x1] %vm124_vm1, %v1073_v0 }
  0xc1 LB: >> { %s298_s24 = sld [smem:[#allocation6 + %s1067_s23]]  ;;  %s301_s27 = scalar_lea.vmem %s1576_s4, %s1067_s23  ;;  %s1067_s23 = sphi %s1065_s23, %s295_s23  }
  0xc2   : >> { %s299_s28 = sld [smem:[#allocation7 + %s1067_s23]]  ;;  %v946_v4 = vld [vmem:[%s301_s27] ss:$0 sm:$0xff] }
  0xc3   : >> { %s300_s29 = sld [smem:[#allocation8 + %s1067_s23]]  ;;  %s295_s23 = sadd.s32 1, %s1067_s23  }
  0xc4   : >> { %p294_p11 = scmp.ge.s32.totalorder %s295_s23, %s1245_s21 }
  0xc7   : >> { %s304_s30 = smul.u32 144, %s298_s24 }
  0xc8   : >> { %s885_s6 = sshll.u32 %s299_s28, 4 }
  0xc9   : >> { %s305_s0 = sadd.s32 %s885_s6, %s304_s30  ;;  %v309_v5 = vstv %s300_s29 }
  0xca   : >> { %vm310_vm2 = vcmp.eq.s32.totalorder %v1433_v2, %v309_v5  ;;  %vm311_vm3 = vcmp.eq.s32.totalorder %v288_v3, %v309_v5  ;;  %s306_s7 = scalar_lea.vmem [#allocation2], %s305_s0  ;;  %297 = sbr.rel (!%p294_p11) target bundleno = 193 (0xc1), region = 223 }
  0xcb   : >> { %v307_v6 = vld [vmem:[%s306_s7] sm:$0xff]  ;;  %v308_v7 = vld [vmem:[%s306_s7 + $0x8] sm:$0x1] }
  0xcc   : >> { %v313_v8 = vsel %vm310_vm2, %v946_v4, %v307_v6  ;;  %v314_v9 = vsel %vm311_vm3, %v946_v4, %v308_v7 }
  0xcd   : >> { %315 = vst.msk [vmem:[%s306_s7] sm:$0xff] %vm122_vm0, %v313_v8 }
  0xce   : >> { %316 = vst.msk [vmem:[%s306_s7 + $0x8] sm:$0x1] %vm124_vm1, %v314_v9 }
  0xcf PF: > { %vm684_vm4 = vcmask 27648   ;;  %vm800_vm5 = vcmask 25600   ;;  %s891_s10 = sshll.u32 %s1139_s3, 3  ;;  %s818_s3 = sshll.u32 %s1505_s22, 4  ;;  %s819_s3 = int_to_ptr.vmem [resolvable:$true] %s818_s3 }
  0xd0   : > { %s817_s18 = scalar_lea.hbm %s1577_s5, %s891_s10  ;;  %s806_s20 = scalar_lea.sflag [#allocation10], %s119_s17 }
  0xd1   : > { %s820_s19 = sshll.u32 %s817_s18, 4  ;;  %s1015_s26 = scalar_lea.hbm %s1577_s5, 16  ;;  %s821_s19 = int_to_ptr.hbm [resolvable:$true] %s820_s19 }
  0xd2   : > { %s1009_s21 = sshra.s32 %s821_s19, 4  ;;  %s1010_s21 = int_to_ptr.hbm [resolvable:$true] %s1009_s21 }
  0xd3   : > { %s1011_s23 = scalar_lea.hbm %s1010_s21, 8  ;;  %p1016_p1 = scmp.lt.s32.totalorder %s1010_s21, %s1577_s5 }
  0xd4   : > { %p1012_p12 = scmp.ne.s32.totalorder %s1010_s21, %s1011_s23  ;;  %p1017_p2 = scmp.lt.s32.totalorder %s1015_s26, %s1011_s23 }
  0xd5   : > { %v317_v10 = vld [vmem:[#allocation2] ss:$2 sm:$0xf]  ;;  %v319_v11 = vld [vmem:[#allocation2 + $0x10] ss:$2 sm:$0xf] }
  0xd6   : > { %v333_v12 = vld [vmem:[#allocation2 + $0x90] ss:$2 sm:$0xf]  ;;  %v335_v13 = vld [vmem:[#allocation2 + $0xa0] ss:$2 sm:$0xf]  ;;  %p1013_p13 = pnand %p1012_p12, %p1156_p5  ;;  %p1018_p3 = por %p1017_p2, %p1016_p1 }
  0xd7   : > { %v445_v14 = vld [vmem:[#allocation2 + $0x1] ss:$2 sm:$0xf]  ;;  %v447_v15 = vld [vmem:[#allocation2 + $0x11] ss:$2 sm:$0xf] }
  0xd8   : > { %v461_v16 = vld [vmem:[#allocation2 + $0x91] ss:$2 sm:$0xf]  ;;  %v463_v17 = vld [vmem:[#allocation2 + $0xa1] ss:$2 sm:$0xf]  ;;  %v572_v18 = vmax.f32 %v317_v10, %v445_v14  ;;  %v573_v19 = vmax.f32 %v319_v11, %v447_v15  ;;  %p1014_p0 = pneg %p1013_p13 }
  0xd9   : > { %v580_v20 = vmax.f32 %v333_v12, %v461_v16  ;;  %v581_v21 = vmax.f32 %v335_v13, %v463_v17  ;;  %v321_v22 = vld [vmem:[#allocation2 + $0x20] ss:$2 sm:$0xf]  ;;  %v323_v24 = vld [vmem:[#allocation2 + $0x30] ss:$2 sm:$0xf] }
  0xda   : > { %v636_v23 = vmax.f32 %v572_v18, %v573_v19  ;;  %v337_v25 = vld [vmem:[#allocation2 + $0xb0] ss:$2 sm:$0xf]  ;;  %v339_v27 = vld [vmem:[#allocation2 + $0xc0] ss:$2 sm:$0xf]  ;;  %p1019_p4 = pnand %p1018_p3, %p1014_p0 }
  0xdb   : > { %v640_v26 = vmax.f32 %v580_v20, %v581_v21  ;;  %v449_v28 = vld [vmem:[#allocation2 + $0x21] ss:$2 sm:$0xf]  ;;  %v451_v29 = vld [vmem:[#allocation2 + $0x31] ss:$2 sm:$0xf] }
  0xdc   : > { %v465_v30 = vld [vmem:[#allocation2 + $0xb1] ss:$2 sm:$0xf]  ;;  %v574_v31 = vmax.f32 %v321_v22, %v449_v28  ;;  %v467_v33 = vld [vmem:[#allocation2 + $0xc1] ss:$2 sm:$0xf]  ;;  %v575_v34 = vmax.f32 %v323_v24, %v451_v29 }
  0xdd   : > { %v668_v32 = vmax.f32 %v636_v23, %v640_v26  ;;  %v582_v35 = vmax.f32 %v337_v25, %v465_v30  ;;  %v325_v36 = vld [vmem:[#allocation2 + $0x40] ss:$2 sm:$0xf]  ;;  %v583_v37 = vmax.f32 %v339_v27, %v467_v33  ;;  %v327_v38 = vld [vmem:[#allocation2 + $0x50] ss:$2 sm:$0xf] }
  0xde   : > { %v341_v39 = vld [vmem:[#allocation2 + $0xd0] ss:$2 sm:$0xf]  ;;  %v637_v40 = vmax.f32 %v574_v31, %v575_v34  ;;  %v343_v41 = vld [vmem:[#allocation2 + $0xe0] ss:$2 sm:$0xf] }
  0xdf   : > { %685 = vst.msk [vmem:[#allocation3] sm:$0xf] %vm684_vm4, %v668_v32  ;;  %v641_v42 = vmax.f32 %v582_v35, %v583_v37  ;;  %v453_v43 = vld [vmem:[#allocation2 + $0x41] ss:$2 sm:$0xf] }
  0xe0   : > { %v455_v44 = vld [vmem:[#allocation2 + $0x51] ss:$2 sm:$0xf]  ;;  %v471_v46 = vld [vmem:[#allocation2 + $0xe1] ss:$2 sm:$0xf]  ;;  %v576_v47 = vmax.f32 %v325_v36, %v453_v43 }
  0xe1   : > { %v469_v45 = vld [vmem:[#allocation2 + $0xd1] ss:$2 sm:$0xf]  ;;  %v577_v48 = vmax.f32 %v327_v38, %v455_v44  ;;  %v669_v49 = vmax.f32 %v637_v40, %v641_v42  ;;  %v585_v51 = vmax.f32 %v343_v41, %v471_v46  ;;  %v329_v52 = vld [vmem:[#allocation2 + $0x60] ss:$2 sm:$0xf] }
  0xe2   : > { %v584_v50 = vmax.f32 %v341_v39, %v469_v45  ;;  %v331_v53 = vld [vmem:[#allocation2 + $0x70] ss:$2 sm:$0xf]  ;;  %v347_v56 = vld [vmem:[#allocation2 + $0x100] ss:$2 sm:$0xf] }
  0xe3   : > { %v638_v54 = vmax.f32 %v576_v47, %v577_v48  ;;  %v345_v55 = vld [vmem:[#allocation2 + $0xf0] ss:$2 sm:$0xf]  ;;  %686 = vst.msk [vmem:[#allocation3 + $0x8] sm:$0xf] %vm684_vm4, %v669_v49 }
  0xe4   : > { %v642_v57 = vmax.f32 %v584_v50, %v585_v51  ;;  %v457_v58 = vld [vmem:[#allocation2 + $0x61] ss:$2 sm:$0xf]  ;;  %v459_v59 = vld [vmem:[#allocation2 + $0x71] ss:$2 sm:$0xf] }
  0xe5   : > { %v473_v60 = vld [vmem:[#allocation2 + $0xf1] ss:$2 sm:$0xf]  ;;  %v578_v61 = vmax.f32 %v329_v52, %v457_v58  ;;  %v475_v63 = vld [vmem:[#allocation2 + $0x101] ss:$2 sm:$0xf]  ;;  %v579_v0 = vmax.f32 %v331_v53, %v459_v59 }
  0xe6   : > { %v670_v62 = vmax.f32 %v638_v54, %v642_v57  ;;  %v586_v1 = vmax.f32 %v345_v55, %v473_v60  ;;  %v349_v2 = vld [vmem:[#allocation2 + $0x120] ss:$2 sm:$0xf]  ;;  %v587_v3 = vmax.f32 %v347_v56, %v475_v63  ;;  %v351_v4 = vld [vmem:[#allocation2 + $0x130] ss:$2 sm:$0xf] }
  0xe7   : > { %v365_v5 = vld [vmem:[#allocation2 + $0x1b0] ss:$2 sm:$0xf]  ;;  %v639_v6 = vmax.f32 %v578_v61, %v579_v0  ;;  %v367_v7 = vld [vmem:[#allocation2 + $0x1c0] ss:$2 sm:$0xf] }
  0xe8   : > { %687 = vst.msk [vmem:[#allocation3 + $0x10] sm:$0xf] %vm684_vm4, %v670_v62  ;;  %v643_v8 = vmax.f32 %v586_v1, %v587_v3  ;;  %v477_v9 = vld [vmem:[#allocation2 + $0x121] ss:$2 sm:$0xf] }
  0xe9   : > { %v479_v10 = vld [vmem:[#allocation2 + $0x131] ss:$2 sm:$0xf]  ;;  %v495_v12 = vld [vmem:[#allocation2 + $0x1c1] ss:$2 sm:$0xf]  ;;  %v588_v13 = vmax.f32 %v349_v2, %v477_v9 }
  0xea   : > { %v493_v11 = vld [vmem:[#allocation2 + $0x1b1] ss:$2 sm:$0xf]  ;;  %v589_v14 = vmax.f32 %v351_v4, %v479_v10  ;;  %v671_v15 = vmax.f32 %v639_v6, %v643_v8  ;;  %v597_v17 = vmax.f32 %v367_v7, %v495_v12  ;;  %v353_v18 = vld [vmem:[#allocation2 + $0x140] ss:$2 sm:$0xf] }
  0xeb   : > { %v596_v16 = vmax.f32 %v365_v5, %v493_v11  ;;  %v355_v19 = vld [vmem:[#allocation2 + $0x150] ss:$2 sm:$0xf]  ;;  %v371_v22 = vld [vmem:[#allocation2 + $0x1e0] ss:$2 sm:$0xf] }
  0xec   : > { %v644_v20 = vmax.f32 %v588_v13, %v589_v14  ;;  %v369_v21 = vld [vmem:[#allocation2 + $0x1d0] ss:$2 sm:$0xf]  ;;  %688 = vst.msk [vmem:[#allocation3 + $0x18] sm:$0xf] %vm684_vm4, %v671_v15 }
  0xed   : > { %v648_v23 = vmax.f32 %v596_v16, %v597_v17  ;;  %v481_v24 = vld [vmem:[#allocation2 + $0x141] ss:$2 sm:$0xf]  ;;  %v483_v25 = vld [vmem:[#allocation2 + $0x151] ss:$2 sm:$0xf] }
  0xee   : > { %v497_v26 = vld [vmem:[#allocation2 + $0x1d1] ss:$2 sm:$0xf]  ;;  %v590_v27 = vmax.f32 %v353_v18, %v481_v24  ;;  %v499_v29 = vld [vmem:[#allocation2 + $0x1e1] ss:$2 sm:$0xf]  ;;  %v591_v30 = vmax.f32 %v355_v19, %v483_v25 }
  0xef   : > { %v672_v28 = vmax.f32 %v644_v20, %v648_v23  ;;  %v598_v31 = vmax.f32 %v369_v21, %v497_v26  ;;  %v357_v32 = vld [vmem:[#allocation2 + $0x160] ss:$2 sm:$0xf]  ;;  %v599_v33 = vmax.f32 %v371_v22, %v499_v29  ;;  %v359_v34 = vld [vmem:[#allocation2 + $0x170] ss:$2 sm:$0xf] }
  0xf0   : > { %v373_v35 = vld [vmem:[#allocation2 + $0x1f0] ss:$2 sm:$0xf]  ;;  %v645_v36 = vmax.f32 %v590_v27, %v591_v30  ;;  %v375_v37 = vld [vmem:[#allocation2 + $0x200] ss:$2 sm:$0xf] }
  0xf1   : > { %689 = vst.msk [vmem:[#allocation3 + $0x28] sm:$0xf] %vm684_vm4, %v672_v28  ;;  %v649_v38 = vmax.f32 %v598_v31, %v599_v33  ;;  %v485_v39 = vld [vmem:[#allocation2 + $0x161] ss:$2 sm:$0xf] }
  0xf2   : > { %v487_v40 = vld [vmem:[#allocation2 + $0x171] ss:$2 sm:$0xf]  ;;  %v503_v42 = vld [vmem:[#allocation2 + $0x201] ss:$2 sm:$0xf]  ;;  %v592_v43 = vmax.f32 %v357_v32, %v485_v39 }
  0xf3   : > { %v501_v41 = vld [vmem:[#allocation2 + $0x1f1] ss:$2 sm:$0xf]  ;;  %v593_v44 = vmax.f32 %v359_v34, %v487_v40  ;;  %v673_v45 = vmax.f32 %v645_v36, %v649_v38  ;;  %v601_v47 = vmax.f32 %v375_v37, %v503_v42  ;;  %v361_v48 = vld [vmem:[#allocation2 + $0x180] ss:$2 sm:$0xf] }
  0xf4   : > { %v600_v46 = vmax.f32 %v373_v35, %v501_v41  ;;  %v363_v49 = vld [vmem:[#allocation2 + $0x190] ss:$2 sm:$0xf]  ;;  %v379_v52 = vld [vmem:[#allocation2 + $0x220] ss:$2 sm:$0xf] }
  0xf5   : > { %v646_v50 = vmax.f32 %v592_v43, %v593_v44  ;;  %v377_v51 = vld [vmem:[#allocation2 + $0x210] ss:$2 sm:$0xf]  ;;  %690 = vst.msk [vmem:[#allocation3 + $0x30] sm:$0xf] %vm684_vm4, %v673_v45 }
  0xf6   : > { %v650_v53 = vmax.f32 %v600_v46, %v601_v47  ;;  %v489_v54 = vld [vmem:[#allocation2 + $0x181] ss:$2 sm:$0xf]  ;;  %v491_v55 = vld [vmem:[#allocation2 + $0x191] ss:$2 sm:$0xf] }
  0xf7   : > { %v505_v56 = vld [vmem:[#allocation2 + $0x211] ss:$2 sm:$0xf]  ;;  %v594_v57 = vmax.f32 %v361_v48, %v489_v54  ;;  %v507_v59 = vld [vmem:[#allocation2 + $0x221] ss:$2 sm:$0xf]  ;;  %v595_v60 = vmax.f32 %v363_v49, %v491_v55 }
  0xf8   : > { %v674_v58 = vmax.f32 %v646_v50, %v650_v53  ;;  %v602_v61 = vmax.f32 %v377_v51, %v505_v56  ;;  %v381_v62 = vld [vmem:[#allocation2 + $0x240] ss:$2 sm:$0xf]  ;;  %v603_v63 = vmax.f32 %v379_v52, %v507_v59  ;;  %v383_v0 = vld [vmem:[#allocation2 + $0x250] ss:$2 sm:$0xf] }
  0xf9   : > { %v397_v1 = vld [vmem:[#allocation2 + $0x2d0] ss:$2 sm:$0xf]  ;;  %v647_v2 = vmax.f32 %v594_v57, %v595_v60  ;;  %v399_v3 = vld [vmem:[#allocation2 + $0x2e0] ss:$2 sm:$0xf] }
  0xfa   : > { %691 = vst.msk [vmem:[#allocation3 + $0x38] sm:$0xf] %vm684_vm4, %v674_v58  ;;  %v651_v4 = vmax.f32 %v602_v61, %v603_v63  ;;  %v509_v5 = vld [vmem:[#allocation2 + $0x241] ss:$2 sm:$0xf] }
  0xfb   : > { %v511_v6 = vld [vmem:[#allocation2 + $0x251] ss:$2 sm:$0xf]  ;;  %v527_v8 = vld [vmem:[#allocation2 + $0x2e1] ss:$2 sm:$0xf]  ;;  %v604_v9 = vmax.f32 %v381_v62, %v509_v5 }
  0xfc   : > { %v525_v7 = vld [vmem:[#allocation2 + $0x2d1] ss:$2 sm:$0xf]  ;;  %v605_v10 = vmax.f32 %v383_v0, %v511_v6  ;;  %v675_v11 = vmax.f32 %v647_v2, %v651_v4  ;;  %v613_v13 = vmax.f32 %v399_v3, %v527_v8  ;;  %v385_v14 = vld [vmem:[#allocation2 + $0x260] ss:$2 sm:$0xf] }
  0xfd   : > { %v612_v12 = vmax.f32 %v397_v1, %v525_v7  ;;  %v387_v15 = vld [vmem:[#allocation2 + $0x270] ss:$2 sm:$0xf]  ;;  %v403_v18 = vld [vmem:[#allocation2 + $0x300] ss:$2 sm:$0xf] }
  0xfe   : > { %v652_v16 = vmax.f32 %v604_v9, %v605_v10  ;;  %v401_v17 = vld [vmem:[#allocation2 + $0x2f0] ss:$2 sm:$0xf]  ;;  %692 = vst.msk [vmem:[#allocation3 + $0x40] sm:$0xf] %vm684_vm4, %v675_v11 }
  0xff   : > { %v656_v19 = vmax.f32 %v612_v12, %v613_v13  ;;  %v513_v20 = vld [vmem:[#allocation2 + $0x261] ss:$2 sm:$0xf]  ;;  %v515_v21 = vld [vmem:[#allocation2 + $0x271] ss:$2 sm:$0xf] }
 0x100   : > { %v529_v22 = vld [vmem:[#allocation2 + $0x2f1] ss:$2 sm:$0xf]  ;;  %v606_v23 = vmax.f32 %v385_v14, %v513_v20  ;;  %v531_v25 = vld [vmem:[#allocation2 + $0x301] ss:$2 sm:$0xf]  ;;  %v607_v26 = vmax.f32 %v387_v15, %v515_v21 }
 0x101   : > { %v676_v24 = vmax.f32 %v652_v16, %v656_v19  ;;  %v614_v27 = vmax.f32 %v401_v17, %v529_v22  ;;  %v389_v28 = vld [vmem:[#allocation2 + $0x280] ss:$2 sm:$0xf]  ;;  %v615_v29 = vmax.f32 %v403_v18, %v531_v25  ;;  %v391_v30 = vld [vmem:[#allocation2 + $0x290] ss:$2 sm:$0xf] }
 0x102   : > { %v405_v31 = vld [vmem:[#allocation2 + $0x310] ss:$2 sm:$0xf]  ;;  %v653_v32 = vmax.f32 %v606_v23, %v607_v26  ;;  %v407_v33 = vld [vmem:[#allocation2 + $0x320] ss:$2 sm:$0xf] }
 0x103   : > { %693 = vst.msk [vmem:[#allocation3 + $0x50] sm:$0xf] %vm684_vm4, %v676_v24  ;;  %v657_v34 = vmax.f32 %v614_v27, %v615_v29  ;;  %v517_v35 = vld [vmem:[#allocation2 + $0x281] ss:$2 sm:$0xf] }
 0x104   : > { %v519_v36 = vld [vmem:[#allocation2 + $0x291] ss:$2 sm:$0xf]  ;;  %v535_v38 = vld [vmem:[#allocation2 + $0x321] ss:$2 sm:$0xf]  ;;  %v608_v39 = vmax.f32 %v389_v28, %v517_v35 }
 0x105   : > { %v533_v37 = vld [vmem:[#allocation2 + $0x311] ss:$2 sm:$0xf]  ;;  %v609_v40 = vmax.f32 %v391_v30, %v519_v36  ;;  %v677_v41 = vmax.f32 %v653_v32, %v657_v34  ;;  %v617_v43 = vmax.f32 %v407_v33, %v535_v38  ;;  %v393_v44 = vld [vmem:[#allocation2 + $0x2a0] ss:$2 sm:$0xf] }
 0x106   : > { %v616_v42 = vmax.f32 %v405_v31, %v533_v37  ;;  %v395_v45 = vld [vmem:[#allocation2 + $0x2b0] ss:$2 sm:$0xf]  ;;  %v411_v48 = vld [vmem:[#allocation2 + $0x340] ss:$2 sm:$0xf] }
 0x107   : > { %v654_v46 = vmax.f32 %v608_v39, %v609_v40  ;;  %v409_v47 = vld [vmem:[#allocation2 + $0x330] ss:$2 sm:$0xf]  ;;  %694 = vst.msk [vmem:[#allocation3 + $0x58] sm:$0xf] %vm684_vm4, %v677_v41 }
 0x108   : > { %v658_v49 = vmax.f32 %v616_v42, %v617_v43  ;;  %v521_v50 = vld [vmem:[#allocation2 + $0x2a1] ss:$2 sm:$0xf]  ;;  %v523_v51 = vld [vmem:[#allocation2 + $0x2b1] ss:$2 sm:$0xf] }
 0x109   : > { %v537_v52 = vld [vmem:[#allocation2 + $0x331] ss:$2 sm:$0xf]  ;;  %v610_v53 = vmax.f32 %v393_v44, %v521_v50  ;;  %v539_v55 = vld [vmem:[#allocation2 + $0x341] ss:$2 sm:$0xf]  ;;  %v611_v56 = vmax.f32 %v395_v45, %v523_v51 }
 0x10a   : > { %v678_v54 = vmax.f32 %v654_v46, %v658_v49  ;;  %v618_v57 = vmax.f32 %v409_v47, %v537_v52  ;;  %v413_v58 = vld [vmem:[#allocation2 + $0x360] ss:$2 sm:$0xf]  ;;  %v619_v59 = vmax.f32 %v411_v48, %v539_v55  ;;  %v415_v60 = vld [vmem:[#allocation2 + $0x370] ss:$2 sm:$0xf] }
 0x10b   : > { %v429_v61 = vld [vmem:[#allocation2 + $0x3f0] ss:$2 sm:$0xf]  ;;  %v655_v62 = vmax.f32 %v610_v53, %v611_v56  ;;  %v431_v63 = vld [vmem:[#allocation2 + $0x400] ss:$2 sm:$0xf] }
 0x10c   : > { %695 = vst.msk [vmem:[#allocation3 + $0x60] sm:$0xf] %vm684_vm4, %v678_v54  ;;  %v659_v0 = vmax.f32 %v618_v57, %v619_v59  ;;  %v541_v1 = vld [vmem:[#allocation2 + $0x361] ss:$2 sm:$0xf] }
 0x10d   : > { %v543_v2 = vld [vmem:[#allocation2 + $0x371] ss:$2 sm:$0xf]  ;;  %v559_v4 = vld [vmem:[#allocation2 + $0x401] ss:$2 sm:$0xf]  ;;  %v620_v5 = vmax.f32 %v413_v58, %v541_v1 }
 0x10e   : > { %v557_v3 = vld [vmem:[#allocation2 + $0x3f1] ss:$2 sm:$0xf]  ;;  %v621_v6 = vmax.f32 %v415_v60, %v543_v2  ;;  %v679_v7 = vmax.f32 %v655_v62, %v659_v0  ;;  %v629_v9 = vmax.f32 %v431_v63, %v559_v4  ;;  %v417_v10 = vld [vmem:[#allocation2 + $0x380] ss:$2 sm:$0xf] }
 0x10f   : > { %v628_v8 = vmax.f32 %v429_v61, %v557_v3  ;;  %v419_v11 = vld [vmem:[#allocation2 + $0x390] ss:$2 sm:$0xf]  ;;  %v435_v14 = vld [vmem:[#allocation2 + $0x420] ss:$2 sm:$0xf] }
 0x110   : > { %v660_v12 = vmax.f32 %v620_v5, %v621_v6  ;;  %v433_v13 = vld [vmem:[#allocation2 + $0x410] ss:$2 sm:$0xf]  ;;  %696 = vst.msk [vmem:[#allocation3 + $0x68] sm:$0xf] %vm684_vm4, %v679_v7 }
 0x111   : > { %v664_v15 = vmax.f32 %v628_v8, %v629_v9  ;;  %v545_v16 = vld [vmem:[#allocation2 + $0x381] ss:$2 sm:$0xf]  ;;  %v547_v17 = vld [vmem:[#allocation2 + $0x391] ss:$2 sm:$0xf] }
 0x112   : > { %v561_v18 = vld [vmem:[#allocation2 + $0x411] ss:$2 sm:$0xf]  ;;  %v622_v19 = vmax.f32 %v417_v10, %v545_v16  ;;  %v563_v21 = vld [vmem:[#allocation2 + $0x421] ss:$2 sm:$0xf]  ;;  %v623_v22 = vmax.f32 %v419_v11, %v547_v17 }
 0x113   : > { %v680_v20 = vmax.f32 %v660_v12, %v664_v15  ;;  %v630_v23 = vmax.f32 %v433_v13, %v561_v18  ;;  %v421_v24 = vld [vmem:[#allocation2 + $0x3a0] ss:$2 sm:$0xf]  ;;  %v631_v25 = vmax.f32 %v435_v14, %v563_v21  ;;  %v423_v26 = vld [vmem:[#allocation2 + $0x3b0] ss:$2 sm:$0xf] }
 0x114   : > { %v437_v27 = vld [vmem:[#allocation2 + $0x430] ss:$2 sm:$0xf]  ;;  %v661_v28 = vmax.f32 %v622_v19, %v623_v22  ;;  %v439_v29 = vld [vmem:[#allocation2 + $0x440] ss:$2 sm:$0xf] }
 0x115   : > { %697 = vst.msk [vmem:[#allocation3 + $0x78] sm:$0xf] %vm684_vm4, %v680_v20  ;;  %v665_v30 = vmax.f32 %v630_v23, %v631_v25  ;;  %v549_v31 = vld [vmem:[#allocation2 + $0x3a1] ss:$2 sm:$0xf] }
 0x116   : > { %v551_v32 = vld [vmem:[#allocation2 + $0x3b1] ss:$2 sm:$0xf]  ;;  %v567_v34 = vld [vmem:[#allocation2 + $0x441] ss:$2 sm:$0xf]  ;;  %v624_v35 = vmax.f32 %v421_v24, %v549_v31 }
 0x117   : > { %v565_v33 = vld [vmem:[#allocation2 + $0x431] ss:$2 sm:$0xf]  ;;  %v625_v36 = vmax.f32 %v423_v26, %v551_v32  ;;  %v681_v37 = vmax.f32 %v661_v28, %v665_v30  ;;  %v633_v39 = vmax.f32 %v439_v29, %v567_v34  ;;  %v425_v40 = vld [vmem:[#allocation2 + $0x3c0] ss:$2 sm:$0xf] }
 0x118   : > { %v632_v38 = vmax.f32 %v437_v27, %v565_v33  ;;  %v427_v41 = vld [vmem:[#allocation2 + $0x3d0] ss:$2 sm:$0xf]  ;;  %v443_v44 = vld [vmem:[#allocation2 + $0x460] ss:$2 sm:$0xf] }
 0x119   : > { %v662_v42 = vmax.f32 %v624_v35, %v625_v36  ;;  %v441_v43 = vld [vmem:[#allocation2 + $0x450] ss:$2 sm:$0xf]  ;;  %698 = vst.msk [vmem:[#allocation3 + $0x80] sm:$0xf] %vm684_vm4, %v681_v37 }
 0x11a   : > { %v666_v45 = vmax.f32 %v632_v38, %v633_v39  ;;  %v553_v46 = vld [vmem:[#allocation2 + $0x3c1] ss:$2 sm:$0xf]  ;;  %v555_v47 = vld [vmem:[#allocation2 + $0x3d1] ss:$2 sm:$0xf] }
 0x11b   : > { %v569_v48 = vld [vmem:[#allocation2 + $0x451] ss:$2 sm:$0xf]  ;;  %v626_v49 = vmax.f32 %v425_v40, %v553_v46  ;;  %v571_v51 = vld [vmem:[#allocation2 + $0x461] ss:$2 sm:$0xf]  ;;  %v627_v52 = vmax.f32 %v427_v41, %v555_v47 }
 0x11c   : > { %v682_v50 = vmax.f32 %v662_v42, %v666_v45  ;;  %v634_v53 = vmax.f32 %v441_v43, %v569_v48  ;;  %v701_v54 = vld [vmem:[#allocation3] ss:$2 sm:$0x3]  ;;  %v635_v55 = vmax.f32 %v443_v44, %v571_v51  ;;  %v703_v56 = vld [vmem:[#allocation3 + $0x8] ss:$2 sm:$0x3] }
 0x11d   : > { %v709_v57 = vld [vmem:[#allocation3 + $0x28] ss:$2 sm:$0x3]  ;;  %v663_v58 = vmax.f32 %v626_v49, %v627_v52  ;;  %v711_v59 = vld [vmem:[#allocation3 + $0x30] ss:$2 sm:$0x3] }
 0x11e   : > { %699 = vst.msk [vmem:[#allocation3 + $0x88] sm:$0xf] %vm684_vm4, %v682_v50  ;;  %v667_v60 = vmax.f32 %v634_v53, %v635_v55  ;;  %v733_v61 = vld [vmem:[#allocation3 + $0x1] ss:$2 sm:$0x3] }
 0x11f   : > { %v735_v62 = vld [vmem:[#allocation3 + $0x9] ss:$2 sm:$0x3]  ;;  %v743_v0 = vld [vmem:[#allocation3 + $0x31] ss:$2 sm:$0x3]  ;;  %v764_v1 = vmax.f32 %v701_v54, %v733_v61 }
 0x120   : > { %v741_v63 = vld [vmem:[#allocation3 + $0x29] ss:$2 sm:$0x3]  ;;  %v765_v2 = vmax.f32 %v703_v56, %v735_v62  ;;  %v683_v3 = vmax.f32 %v663_v58, %v667_v60  ;;  %v769_v5 = vmax.f32 %v711_v59, %v743_v0  ;;  %v705_v6 = vld [vmem:[#allocation3 + $0x10] ss:$2 sm:$0x3] }
 0x121   : > { %v768_v4 = vmax.f32 %v709_v57, %v741_v63  ;;  %v707_v7 = vld [vmem:[#allocation3 + $0x18] ss:$2 sm:$0x3]  ;;  %v715_v10 = vld [vmem:[#allocation3 + $0x40] ss:$2 sm:$0x3] }
 0x122   : > { %v780_v8 = vmax.f32 %v764_v1, %v765_v2  ;;  %v713_v9 = vld [vmem:[#allocation3 + $0x38] ss:$2 sm:$0x3]  ;;  %700 = vst.msk [vmem:[#allocation3 + $0x90] sm:$0xf] %vm684_vm4, %v683_v3 }
 0x123   : > { %v782_v11 = vmax.f32 %v768_v4, %v769_v5  ;;  %v737_v12 = vld [vmem:[#allocation3 + $0x11] ss:$2 sm:$0x3]  ;;  %v739_v13 = vld [vmem:[#allocation3 + $0x19] ss:$2 sm:$0x3] }
 0x124   : > { %v745_v14 = vld [vmem:[#allocation3 + $0x39] ss:$2 sm:$0x3]  ;;  %v766_v15 = vmax.f32 %v705_v6, %v737_v12  ;;  %v747_v17 = vld [vmem:[#allocation3 + $0x41] ss:$2 sm:$0x3]  ;;  %v767_v18 = vmax.f32 %v707_v7, %v739_v13 }
 0x125   : > { %v788_v16 = vmax.f32 %v780_v8, %v782_v11  ;;  %v770_v19 = vmax.f32 %v713_v9, %v745_v14  ;;  %v717_v20 = vld [vmem:[#allocation3 + $0x50] ss:$2 sm:$0x3]  ;;  %v771_v21 = vmax.f32 %v715_v10, %v747_v17  ;;  %v719_v22 = vld [vmem:[#allocation3 + $0x58] ss:$2 sm:$0x3] }
 0x126   : > { %v725_v23 = vld [vmem:[#allocation3 + $0x78] ss:$2 sm:$0x3]  ;;  %v781_v24 = vmax.f32 %v766_v15, %v767_v18  ;;  %v727_v25 = vld [vmem:[#allocation3 + $0x80] ss:$2 sm:$0x3] }
 0x127   : > { %vm792_vm6 = vcmp.eq.f32.partialorder %v788_v16, -inf  ;;  %v783_v27 = vmax.f32 %v770_v19, %v771_v21  ;;  %v749_v28 = vld [vmem:[#allocation3 + $0x51] ss:$2 sm:$0x3] }
 0x128   : > { %v796_v26 = vsel %vm792_vm6, 0.0, %v788_v16  ;;  %v751_v29 = vld [vmem:[#allocation3 + $0x59] ss:$2 sm:$0x3]  ;;  %v772_v30 = vmax.f32 %v717_v20, %v749_v28 }
 0x129   : > { %801 = vst.msk [vmem:[%s1505_s22] sm:$0x3] %vm800_vm5, %v796_v26  ;;  %v789_v31 = vmax.f32 %v781_v24, %v783_v27  ;;  %v757_v32 = vld [vmem:[#allocation3 + $0x79] ss:$2 sm:$0x3]  ;;  %v773_v34 = vmax.f32 %v719_v22, %v751_v29 }
 0x12a   : > { %v759_v33 = vld [vmem:[#allocation3 + $0x81] ss:$2 sm:$0x3]  ;;  %v776_v35 = vmax.f32 %v725_v23, %v757_v32  ;;  %v721_v37 = vld [vmem:[#allocation3 + $0x60] ss:$2 sm:$0x3] }
 0x12b   : > { %v777_v36 = vmax.f32 %v727_v25, %v759_v33  ;;  %v723_v38 = vld [vmem:[#allocation3 + $0x68] ss:$2 sm:$0x3]  ;;  %vm793_vm7 = vcmp.eq.f32.partialorder %v789_v31, -inf  ;;  %v784_v39 = vmax.f32 %v772_v30, %v773_v34 }
 0x12c   : > { %v729_v40 = vld [vmem:[#allocation3 + $0x88] ss:$2 sm:$0x3]  ;;  %v797_v41 = vsel %vm793_vm7, 0.0, %v789_v31 }
 0x12d   : > { %v786_v42 = vmax.f32 %v776_v35, %v777_v36  ;;  %v731_v43 = vld [vmem:[#allocation3 + $0x90] ss:$2 sm:$0x3]  ;;  %802 = vst.msk [vmem:[%s1505_s22 + $0x2] sm:$0x3] %vm800_vm5, %v797_v41 }
 0x12e   : > { %v753_v44 = vld [vmem:[#allocation3 + $0x61] ss:$2 sm:$0x3]  ;;  %v755_v46 = vld [vmem:[#allocation3 + $0x69] ss:$2 sm:$0x3] }
 0x12f   : > { %v790_v45 = vmax.f32 %v784_v39, %v786_v42  ;;  %v761_v47 = vld [vmem:[#allocation3 + $0x89] ss:$2 sm:$0x3]  ;;  %v774_v48 = vmax.f32 %v721_v37, %v753_v44  ;;  %v763_v49 = vld [vmem:[#allocation3 + $0x91] ss:$2 sm:$0x3]  ;;  %v775_v50 = vmax.f32 %v723_v38, %v755_v46 }
 0x130   : > { %v778_v51 = vmax.f32 %v729_v40, %v761_v47  ;;  %v779_v52 = vmax.f32 %v731_v43, %v763_v49 }
 0x131   : > { %vm794_vm8 = vcmp.eq.f32.partialorder %v790_v45, -inf  ;;  %v785_v54 = vmax.f32 %v774_v48, %v775_v50 }
 0x132   : > { %v798_v53 = vsel %vm794_vm8, 0.0, %v790_v45  ;;  %v787_v55 = vmax.f32 %v778_v51, %v779_v52 }
 0x133   : > { %803 = vst.msk [vmem:[%s1505_s22 + $0x4] sm:$0x3] %vm800_vm5, %v798_v53 }
 0x134   : > { %v791_v56 = vmax.f32 %v785_v54, %v787_v55 }
 0x136   : > { %vm795_vm9 = vcmp.eq.f32.partialorder %v791_v56, -inf }
 0x137   : > { %v799_v57 = vsel %vm795_vm9, 0.0, %v791_v56 }
 0x138   : > { %804 = vst.msk [vmem:[%s1505_s22 + $0x6] sm:$0x3] %vm800_vm5, %v799_v57 }
 0x139   : > { %1022 = shalt.err (!%p1019_p4)
}
 0x13a   : > { %s1074_s17 = smov 32   ;;  %s1075_s22 = smov 2  }
 0x13b   : > { %892 = dma.vmem_to_hbm [thread:$0]  (%p1156_p5), %s819_s3, 128, %s821_s19, %s806_s20, %s1074_s17, %s1074_s17, %s1075_s22  }
 0x13c PF: > { %p898_p7 = scmp.ge.s32.totalorder %s1063_s9, 2  ;;  %s835_s29 = sand.u32 1, %s1051_s1  }
 0x13d   : > { %s836_s30 = scalar_lea.sflag [#allocation10], %s835_s29 }
 0x13e   : > { %p895_p8 = pnand %p898_p7, %p1160_p6 }
 0x140   : > { %p896_p9 = pneg %p895_p8 }
 0x142   : > { %1046 = dma.done.wait (%p896_p9), %s836_s30, 128  }
 0x143   : > { %1048 = vsyncadd (%p896_p9), %s836_s30, 4294967168  ;;  %p38_p10 = scmp.ge.s32.totalorder %s1143_s11, 4   ;;  %s1583_s1 = smov %s1055_s8 }
 0x144   : > { %s1584_s8 = smov %s1059_s2  ;;  %s1585_s2 = smov %s1154_s14 }
 0x145   : > { %s1586_s9 = smov %s1143_s11  ;;  %40 = sbr.rel (!%p38_p10) target bundleno = 14 (0xe), region = 234 }
 0x14a   :  { %842 = vsyncpa [#allocation10], 1 }
 0x14b   :  { %844 = vsyncpa [#allocation10 + $0x1], 1 }

</bundles_post_ra>
